<compile_context>
chip_gen: v7x
topology: tpu7x:2x2x1
jax: 0.10.0
libtpu: 0.0.40
codegen_flags: <defaults>
</compile_context>

<pallas_src>
import functools
import math

import jax
import jax.numpy as jnp
from jax.experimental import pallas as pl
from jax.experimental.pallas import tpu as pltpu

P = 2                      # outer "parallel" grid axis (v7x has 2 TensorCores)
LN2 = math.log(2.0)


# --------------------------------------------------------------------------- #
# Hardware-aware configuration helpers
# --------------------------------------------------------------------------- #
def _tpu_defaults():
    kind = ""
    try:
        kind = jax.devices()[0].device_kind.lower()
    except Exception:
        pass
    try:
        vmem_phys = int(pltpu.get_tpu_info().vmem_capacity_bytes)
    except Exception:
        vmem_phys = 64 * 1024 * 1024            # conservative (v7x per-TC size)
    if vmem_phys >= 96 * 1024 * 1024:           # v5e / v6e: 128 MiB VMEM
        budget, tn_max = 48 * 1024 * 1024, 32768
    else:                                       # v7x: 64 MiB per TC
        budget, tn_max = 22 * 1024 * 1024, 16384
    # bf16 EUP/VPU only on v6e / v7x; v5e keeps the f32 elementwise chain.
    use_bf16_eltwise = ("v6" in kind) or ("v7" in kind)
    return use_bf16_eltwise, budget, tn_max, vmem_phys


def _round_up(x, m):
    return ((x + m - 1) // m) * m


def _sublane(itemsize):
    return 8 * max(1, 4 // itemsize)            # 8 for f32, 16 for bf16


def _choose_chunk(Bp, tn):
    # Keep each per-chunk temporary <= ~16 vregs (64 KiB f32) so the chain
    # stays in registers even at realistic batch sizes.
    c = max(128, min(512, ((64 * 1024) // (4 * max(Bp, 1))) // 128 * 128))
    return min(c, tn)


def _tile_vmem_bytes(tn, row_w, itemsize, Bp, chunk):
    # Lane/sublane-padded sizes (the review: row_w=48 pads to 128 lanes when it
    # is the minor dim; transposed it only pads sublanes).
    rw_sub = _round_up(row_w, _sublane(itemsize))
    bank = 2 * rw_sub * tn * itemsize                               # 2x buffered tile
    lhs = 2 * _round_up(2 * Bp, _sublane(itemsize)) * _round_up(row_w, 128) * itemsize
    res = _round_up(2 * Bp, 8) * tn * 4                             # f32 MXU result
    out = 2 * 3 * Bp * 128 * 4                                      # resident partials
    tmp = 8 * Bp * chunk * 4                                        # chunk temporaries
    return int(1.2 * (bank + lhs + res + out + tmp))


def _choose_tiling(num_train, row_w, itemsize, Bp, budget, tn_max):
    tiles_pc = pl.cdiv(num_train, P * 128)          # 128-column tiles per core
    nb = min(tn_max // 128, tiles_pc)
    while nb > 1 and _tile_vmem_bytes(128 * nb, row_w, itemsize, Bp,
                                      _choose_chunk(Bp, 128 * nb)) > budget:
        nb -= 1
    cb = _choose_chunk(Bp, 128 * nb) // 128
    if nb > cb:                                     # keep TN a multiple of chunk
        nb = (nb // cb) * cb
    tn = 128 * nb
    steps = pl.cdiv(num_train, P * tn)
    padded = P * tn * steps
    chunk = _choose_chunk(Bp, tn)
    if tn % chunk:
        chunk = 128
    return tn, steps, padded, chunk


def make_bank(num_train, bit, n_class, batch, dtype=jnp.bfloat16):
    """Allocate the fused, transposed memory bank UY_T = [U | Y]^T, pre-padded to
    the kernel's grid so no per-call jnp.pad (a full HBM copy) is ever needed.
    Padded columns must stay exactly zero (ind must always be < num_train)."""
    row_w = bit + n_class
    Bp = _round_up(max(batch, 1), 8)
    _, budget, tn_max, _ = _tpu_defaults()
    itemsize = jnp.dtype(dtype).itemsize
    _, _, padded, _ = _choose_tiling(num_train, row_w, itemsize, Bp, budget, tn_max)
    return jnp.zeros((row_w, padded), dtype)


# --------------------------------------------------------------------------- #
# Kernel
# --------------------------------------------------------------------------- #
def _hashnet_partials_kernel(lhs_ref, bank_ref, out_ref, *, Bp, TN, chunk, elt_dtype):
    """Grid = (P, steps).

    lhs_ref : (2*Bp, row_w)   block-diagonal [[alpha*tanh(u), 0], [0, y]]  (bf16)
    bank_ref: (row_w, TN)     one lane-dense tile of UY_T = [U | Y]^T      (bf16)
    out_ref : (1, 3, Bp, 128) per-core partials: [sum_all, sum_pos, count_pos]
    """
    j = pl.program_id(1)

    @pl.when(j == 0)
    def _():
        out_ref[...] = jnp.zeros_like(out_ref)

    # One fused MXU pass per bank tile:
    #   rows 0..Bp-1   -> alpha * tanh(u) @ U_tile   (dp; alpha pre-folded)
    #   rows Bp..2Bp-1 -> y @ Y_tile                 (similarity logits)
    res = jnp.dot(lhs_ref[...], bank_ref[...],
                  preferred_element_type=jnp.float32)          # (2*Bp, TN) f32

    a_all = jnp.zeros((Bp, 128), jnp.float32)
    a_pos = jnp.zeros((Bp, 128), jnp.float32)
    a_cnt = jnp.zeros((Bp, 128), jnp.float32)

    # Column-chunked elementwise chain: temporaries stay vreg-resident instead
    # of materialising several (Bp, TN) f32 arrays in VMEM (vst-slot bound).
    for c in range(TN // chunk):
        sl = slice(c * chunk, (c + 1) * chunk)
        dp = res[:Bp, sl]                                      # (Bp, chunk) f32
        sim = (res[Bp:, sl] > 0.0).astype(jnp.float32)
        dpe = dp.astype(elt_dtype)                             # bf16 on v6e/v7x
        # exp_loss = log(1 + exp(-|dp|)) + clamp(dp, min=0) - sim * dp
        el = (jnp.log1p(jnp.exp(-jnp.abs(dpe)))
              + jnp.maximum(dpe, 0)).astype(jnp.float32) - sim * dp
        ps = sim * el
        for k in range(chunk // 128):
            ks = slice(k * 128, (k + 1) * 128)
            a_all = a_all + el[:, ks]
            a_pos = a_pos + ps[:, ks]
            a_cnt = a_cnt + sim[:, ks]

    out_ref[0, 0, :, :] += a_all
    out_ref[0, 1, :, :] += a_pos
    out_ref[0, 2, :, :] += a_cnt


# --------------------------------------------------------------------------- #
# Wrapper (forward pass)
# --------------------------------------------------------------------------- #
@functools.partial(jax.jit,
                   static_argnames=("num_train", "alpha", "scale"),
                   donate_argnames=("UY_T",))
def hashnet_loss(u, y, ind, UY_T, *, num_train, alpha=0.1, scale=1.0):
    """HashNet loss forward.

    UY_T is the fused, transposed memory bank [U | Y]^T of shape
    (bit + n_class, padded_num_train) — allocate it with make_bank().
    Returns (loss, UY_T_new); UY_T_new replaces the PyTorch in-place bank update
    (U = UY_T_new[:bit].T, Y = UY_T_new[bit:].T).
    """
    B, bit = u.shape
    _, n_class = y.shape
    row_w, n_bank = UY_T.shape
    assert row_w == bit + n_class
    bank_dtype = UY_T.dtype
    itemsize = jnp.dtype(bank_dtype).itemsize

    use_bf16, budget, tn_max, vmem_phys = _tpu_defaults()
    Bp = _round_up(B, 8)                       # sublane-aligned batch split
    tn, steps, padded, chunk = _choose_tiling(num_train, row_w, itemsize, Bp,
                                              budget, tn_max)

    u_t = jnp.tanh(scale * u.astype(jnp.float32))    # tanh(scale * u)
    y_f = y.astype(jnp.float32)

    # self.U[ind, :] = u ; self.Y[ind, :] = y.float()   (bank donated -> in place)
    new_cols = jnp.concatenate([u_t, y_f], axis=1).T.astype(bank_dtype)  # (row_w, B)
    bank = UY_T.at[:, ind].set(new_cols)

    if n_bank != padded:
        # TODO(synk): allocate the bank with make_bank() so this per-call HBM
        # copy of the whole bank never runs (padded columns stay zero forever).
        if n_bank < padded:
            bank = jnp.pad(bank, ((0, 0), (0, padded - n_bank)))
        else:
            bank = bank[:, :padded]

    # Pad the batch to a sublane multiple; padded rows are all-zero -> dp == 0,
    # sim == 0 (handled by the ln(2) wrapper correction below).
    if Bp != B:
        u_t = jnp.pad(u_t, ((0, Bp - B), (0, 0)))
        y_f = jnp.pad(y_f, ((0, Bp - B), (0, 0)))

    # Block-diagonal lhs: one matmul produces both dp and the similarity logits.
    # alpha is folded here (saves one (B, TN) VPU multiply per tile).
    lhs = jnp.concatenate(
        [jnp.concatenate([alpha * u_t, jnp.zeros((Bp, n_class), jnp.float32)], axis=1),
         jnp.concatenate([jnp.zeros((Bp, bit), jnp.float32), y_f], axis=1)],
        axis=0).astype(bank_dtype)                            # (2*Bp, row_w)

    kernel = functools.partial(
        _hashnet_partials_kernel,
        Bp=Bp, TN=tn, chunk=chunk,
        elt_dtype=(jnp.bfloat16 if use_bf16 else jnp.float32))

    est = _tile_vmem_bytes(tn, row_w, itemsize, Bp, chunk)
    vmem_limit = None
    if est > 12 * 1024 * 1024:
        vmem_limit = int(min(max(est + 8 * 1024 * 1024, 28 * 1024 * 1024),
                             vmem_phys * 3 // 4))

    parts = pl.pallas_call(
        kernel,
        out_shape=jax.ShapeDtypeStruct((P, 3, Bp, 128), jnp.float32),
        grid_spec=pltpu.PrefetchScalarGridSpec(
            num_scalar_prefetch=0,
            grid=(P, steps),
            in_specs=[
                pl.BlockSpec((2 * Bp, row_w), lambda p, j: (0, 0)),
                pl.BlockSpec((row_w, tn), lambda p, j: (0, p * steps + j)),
            ],
            out_specs=pl.BlockSpec((1, 3, Bp, 128), lambda p, j: (p, 0, 0, 0)),
        ),
        compiler_params=pltpu.CompilerParams(
            dimension_semantics=("parallel", "arbitrary"),
            vmem_limit_bytes=vmem_limit),
    )(lhs, bank)

    # Final scalar combine (tiny) in plain JAX.
    sum_all = jnp.sum(parts[:, 0])
    sum_pos = jnp.sum(parts[:, 1])
    cnt_pos = jnp.sum(parts[:, 2])

    # Padded batch rows / padded bank columns contribute exactly ln(2) each to
    # sum_all (dp == 0, sim == 0 there); correct here instead of masking in-kernel.
    pad_pairs = Bp * padded - B * num_train
    if pad_pairs:
        sum_all = sum_all - jnp.float32(LN2 * pad_pairs)

    sum_neg = sum_all - sum_pos
    cnt_neg = jnp.float32(B * num_train) - cnt_pos
    # loss = sum_pos*(S/S1)/S + sum_neg*(S/S0)/S = sum_pos/S1 + sum_neg/S0
    loss = (sum_pos / jnp.maximum(cnt_pos, 1.0)
            + sum_neg / jnp.maximum(cnt_neg, 1.0))
    return loss, bank


# --------------------------------------------------------------------------- #
# Pure-JAX reference (f32 reproduction of the PyTorch forward)
# --------------------------------------------------------------------------- #
def _reference(u, y, ind, U, Y, alpha, scale):
    y_f = y.astype(jnp.float32)
    u_t = jnp.tanh(scale * u)
    U_new = U.at[ind].set(u_t)
    Y_new = Y.at[ind].set(y_f)
    sim = (y_f @ Y_new.T > 0).astype(jnp.float32)
    dp = alpha * (u_t @ U_new.T)
    exp_loss = jnp.log1p(jnp.exp(-jnp.abs(dp))) + jnp.maximum(dp, 0.0) - sim * dp
    pos = sim > 0
    S1 = pos.astype(jnp.float32).sum()
    S0 = (~pos).astype(jnp.float32).sum()
    S = S0 + S1
    w = jnp.where(pos, S / S1, S / S0)
    return (exp_loss * w).sum() / S


if __name__ == "__main__":
    # Small deterministic problem consistent with HashNetLoss.__init__:
    #   num_train = 256, bit = 32, n_class = 16, batch = 8
    key = jax.random.PRNGKey(0)
    k_u, k_lbl, k_ind = jax.random.split(key, 3)

    B, bit, n_class, num_train = 8, 32, 16, 256
    alpha, scale = 0.1, 1.0

    u = jax.random.normal(k_u, (B, bit), dtype=jnp.float32)
    labels = jax.random.randint(k_lbl, (B,), 0, n_class)
    y = jax.nn.one_hot(labels, n_class, dtype=jnp.float32)
    ind = jax.random.permutation(k_ind, num_train)[:B]

    # Fused, transposed, pre-padded bf16 memory bank [U | Y]^T (zeros, like torch).
    UY_T0 = make_bank(num_train, bit, n_class, batch=B, dtype=jnp.bfloat16)

    loss, UY_T1 = hashnet_loss(u, y, ind, UY_T0, num_train=num_train,
                               alpha=alpha, scale=scale)
    loss = jax.block_until_ready(loss)

    U0 = jnp.zeros((num_train, bit), jnp.float32)
    Y0 = jnp.zeros((num_train, n_class), jnp.float32)
    ref = _reference(u, y, ind, U0, Y0, alpha, scale)

    assert jnp.isfinite(loss), "loss is not finite"
    # bf16 memory bank (+ bf16 eltwise chain on v6e/v7x) -> loosened tolerance.
    assert jnp.allclose(loss, ref, rtol=2e-2, atol=1e-3), (loss, ref)

    print("KERNEL_OK")
</pallas_src>

<mosaic_0001>
module attributes {stable_mosaic.version = 11 : i64} {
  func.func @_hashnet_partials_kernel(%arg0: i32, %arg1: i32, %arg2: memref<16x48xbf16, #tpu.memory_space<vmem>>, %arg3: memref<48x128xbf16, #tpu.memory_space<vmem>>, %arg4: memref<1x3x8x128xf32, #tpu.memory_space<vmem>>) attributes {dimension_semantics = [#tpu.dimension_semantics<parallel>, #tpu.dimension_semantics<arbitrary>], iteration_bounds = array<i64: 2, 1>, scalar_prefetch = 0 : i64, scratch_operands = 0 : i64, tpu.core_type = #tpu.core_type<tc>, window_params = [{pipeline_mode = #tpu.pipeline_mode<synchronous>, transform_indices = @transform_0, window_bounds = array<i64: 16, 48>}, {transform_indices = @transform_1, window_bounds = array<i64: 48, 128>}, {transform_indices = @transform_2, window_bounds = array<i64: 1, 3, 8, 128>}]} {
    %c0_i32 = arith.constant 0 : i32
    %0 = arith.cmpi eq, %arg1, %c0_i32 : i32
    %1 = arith.extui %0 : i1 to i32
    %c0_i32_0 = arith.constant 0 : i32
    %2 = arith.cmpi ne, %1, %c0_i32_0 : i32
    scf.if %2 {
      %cst_32 = arith.constant 0.000000e+00 : f32
      %47 = vector.broadcast %cst_32 : f32 to vector<1x3x8x128xf32>
      %c0_33 = arith.constant 0 : index
      %c0_34 = arith.constant 0 : index
      %c0_35 = arith.constant 0 : index
      %c0_36 = arith.constant 0 : index
      %48 = vector.load %arg4[%c0_33, %c0_34, %c0_35, %c0_36] : memref<1x3x8x128xf32, #tpu.memory_space<vmem>>, vector<1x3x8x128xf32>
      tpu.vector_store %arg4[%c0_33, %c0_34, %c0_35, %c0_36], %47 {strides = array<i32>} : memref<1x3x8x128xf32, #tpu.memory_space<vmem>>, vector<1x3x8x128xf32>,
    } else {
    }
    %c0 = arith.constant 0 : index
    %c0_1 = arith.constant 0 : index
    %3 = vector.load %arg2[%c0, %c0_1] : memref<16x48xbf16, #tpu.memory_space<vmem>>, vector<16x48xbf16>
    %c0_2 = arith.constant 0 : index
    %c0_3 = arith.constant 0 : index
    %4 = vector.load %arg3[%c0_2, %c0_3] : memref<48x128xbf16, #tpu.memory_space<vmem>>, vector<48x128xbf16>
    %cst = arith.constant dense<0.000000e+00> : vector<16x128xf32>
    %5 = tpu.matmul %3, %4, %cst {dimension_numbers = #tpu.dot_dimension_numbers<[1], [0], [0], [1], [0, 0, 1, 1], [], []>} : vector<16x48xbf16>, vector<48x128xbf16>, vector<16x128xf32> -> vector<16x128xf32>
    %cst_4 = arith.constant 0.000000e+00 : f32
    %6 = vector.broadcast %cst_4 : f32 to vector<8x128xf32>
    %cst_5 = arith.constant 0.000000e+00 : f32
    %7 = vector.broadcast %cst_5 : f32 to vector<8x128xf32>
    %cst_6 = arith.constant 0.000000e+00 : f32
    %8 = vector.broadcast %cst_6 : f32 to vector<8x128xf32>
    %9 = vector.extract_strided_slice %5 {offsets = [0, 0], sizes = [8, 128], strides = [1, 1]} : vector<16x128xf32> to vector<8x128xf32>
    %10 = vector.extract_strided_slice %5 {offsets = [8, 0], sizes = [8, 128], strides = [1, 1]} : vector<16x128xf32> to vector<8x128xf32>
    %cst_7 = arith.constant 0.000000e+00 : f32
    %11 = vector.broadcast %cst_7 : f32 to vector<8x128xf32>
    %12 = arith.cmpf ogt, %10, %11 : vector<8x128xf32>
    %13 = arith.extui %12 : vector<8x128xi1> to vector<8x128xi32>
    %14 = arith.sitofp %13 : vector<8x128xi32> to vector<8x128xf32>
    %15 = math.absf %9 : vector<8x128xf32>
    %cst_8 = arith.constant 0.000000e+00 : f32
    %16 = vector.broadcast %cst_8 : f32 to vector<8x128xf32>
    %17 = arith.subf %16, %15 : vector<8x128xf32>
    %18 = math.exp %17 : vector<8x128xf32>
    %19 = math.log1p %18 : vector<8x128xf32>
    %cst_9 = arith.constant 0.000000e+00 : f32
    %20 = vector.broadcast %cst_9 : f32 to vector<8x128xf32>
    %21 = arith.maximumf %9, %20 : vector<8x128xf32>
    %22 = arith.addf %19, %21 : vector<8x128xf32>
    %23 = arith.mulf %14, %9 : vector<8x128xf32>
    %24 = arith.subf %22, %23 : vector<8x128xf32>
    %25 = arith.mulf %14, %24 : vector<8x128xf32>
    %26 = arith.addf %6, %24 : vector<8x128xf32>
    %27 = arith.addf %7, %25 : vector<8x128xf32>
    %28 = arith.addf %8, %14 : vector<8x128xf32>
    %c0_10 = arith.constant 0 : index
    %c0_11 = arith.constant 0 : index
    %c0_12 = arith.constant 0 : index
    %c0_13 = arith.constant 0 : index
    %29 = vector.load %arg4[%c0_10, %c0_11, %c0_12, %c0_13] : memref<1x3x8x128xf32, #tpu.memory_space<vmem>>, vector<1x1x8x128xf32>
    %30 = vector.shape_cast %29 : vector<1x1x8x128xf32> to vector<8x128xf32>
    %31 = arith.addf %30, %26 : vector<8x128xf32>
    %c0_14 = arith.constant 0 : index
    %c0_15 = arith.constant 0 : index
    %c0_16 = arith.constant 0 : index
    %c0_17 = arith.constant 0 : index
    %32 = vector.load %arg4[%c0_14, %c0_15, %c0_16, %c0_17] : memref<1x3x8x128xf32, #tpu.memory_space<vmem>>, vector<1x1x8x128xf32>
    %33 = vector.shape_cast %32 : vector<1x1x8x128xf32> to vector<8x128xf32>
    %34 = vector.shape_cast %31 : vector<8x128xf32> to vector<1x1x8x128xf32>
    tpu.vector_store %arg4[%c0_14, %c0_15, %c0_16, %c0_17], %34 {strides = array<i32>} : memref<1x3x8x128xf32, #tpu.memory_space<vmem>>, vector<1x1x8x128xf32>,
    %c0_18 = arith.constant 0 : index
    %c1 = arith.constant 1 : index
    %c0_19 = arith.constant 0 : index
    %c0_20 = arith.constant 0 : index
    %35 = vector.load %arg4[%c0_18, %c1, %c0_19, %c0_20] : memref<1x3x8x128xf32, #tpu.memory_space<vmem>>, vector<1x1x8x128xf32>
    %36 = vector.shape_cast %35 : vector<1x1x8x128xf32> to vector<8x128xf32>
    %37 = arith.addf %36, %27 : vector<8x128xf32>
    %c0_21 = arith.constant 0 : index
    %c1_22 = arith.constant 1 : index
    %c0_23 = arith.constant 0 : index
    %c0_24 = arith.constant 0 : index
    %38 = vector.load %arg4[%c0_21, %c1_22, %c0_23, %c0_24] : memref<1x3x8x128xf32, #tpu.memory_space<vmem>>, vector<1x1x8x128xf32>
    %39 = vector.shape_cast %38 : vector<1x1x8x128xf32> to vector<8x128xf32>
    %40 = vector.shape_cast %37 : vector<8x128xf32> to vector<1x1x8x128xf32>
    tpu.vector_store %arg4[%c0_21, %c1_22, %c0_23, %c0_24], %40 {strides = array<i32>} : memref<1x3x8x128xf32, #tpu.memory_space<vmem>>, vector<1x1x8x128xf32>,
    %c0_25 = arith.constant 0 : index
    %c2 = arith.constant 2 : index
    %c0_26 = arith.constant 0 : index
    %c0_27 = arith.constant 0 : index
    %41 = vector.load %arg4[%c0_25, %c2, %c0_26, %c0_27] : memref<1x3x8x128xf32, #tpu.memory_space<vmem>>, vector<1x1x8x128xf32>
    %42 = vector.shape_cast %41 : vector<1x1x8x128xf32> to vector<8x128xf32>
    %43 = arith.addf %42, %28 : vector<8x128xf32>
    %c0_28 = arith.constant 0 : index
    %c2_29 = arith.constant 2 : index
    %c0_30 = arith.constant 0 : index
    %c0_31 = arith.constant 0 : index
    %44 = vector.load %arg4[%c0_28, %c2_29, %c0_30, %c0_31] : memref<1x3x8x128xf32, #tpu.memory_space<vmem>>, vector<1x1x8x128xf32>
    %45 = vector.shape_cast %44 : vector<1x1x8x128xf32> to vector<8x128xf32>
    %46 = vector.shape_cast %43 : vector<8x128xf32> to vector<1x1x8x128xf32>
    tpu.vector_store %arg4[%c0_28, %c2_29, %c0_30, %c0_31], %46 {strides = array<i32>} : memref<1x3x8x128xf32, #tpu.memory_space<vmem>>, vector<1x1x8x128xf32>,
    return
  }
  func.func @transform_0(%arg0: i32, %arg1: i32) -> (i32, i32) {
    %c0_i32 = arith.constant 0 : i32
    %c0_i32_0 = arith.constant 0 : i32
    %c0_i32_1 = arith.constant 0 : i32
    return %c0_i32, %c0_i32_0 : i32, i32
  }
  func.func @transform_1(%arg0: i32, %arg1: i32) -> (i32, i32) {
    %c1_i32 = arith.constant 1 : i32
    %0 = arith.muli %arg0, %c1_i32 : i32
    %1 = arith.addi %0, %arg1 : i32
    %c0_i32 = arith.constant 0 : i32
    %c0_i32_0 = arith.constant 0 : i32
    return %c0_i32, %1 : i32, i32
  }
  func.func @transform_2(%arg0: i32, %arg1: i32) -> (i32, i32, i32, i32) {
    %c0_i32 = arith.constant 0 : i32
    %c0_i32_0 = arith.constant 0 : i32
    %c0_i32_1 = arith.constant 0 : i32
    %c0_i32_2 = arith.constant 0 : i32
    return %arg0, %c0_i32, %c0_i32_0, %c0_i32_1 : i32, i32, i32, i32
  }
}

</mosaic_0001>

<bundles_post_ra>
// kernel: hashnet_loss.1
= control target key start
LH: loop header
LB: loop body
LE: loop exit
PB: predicated region body
PF: predicated region fallthrough
CT: control target
= control target key end

     0   :  { %s553_s9 = smov 0   ;;  %s555_s10 = smov 0   ;;  %s622_s0 = inlined_call_operand.vmem [shape: bf16[16,48], index: 0, kind: input, shape index: {}]   ;;  %s623_s1 = inlined_call_operand.vmem [shape: bf16[48,256], index: 1, kind: input, shape index: {}]   ;;  %s624_s2 = inlined_call_operand.vmem [shape: f32[2,3,8,128], index: 2, kind: output, shape index: {}]  }
   0x1   :  { %s557_s11 = smov 0   ;;  %s559_s12 = smov 0  }
   0x2   :  { %s561_s13 = smov 0  }
   0x3 LB: > { %s24_s14 = sadd.s32 1, %s530_s12  ;;  %p61_p1 = scmp.ne.s32.totalorder %s522_s10, %s518_s9  ;;  %s534_s13 = sphi %s561_s13, %s12_s13   ;;  %s530_s12 = sphi %s559_s12, %s628_s12   ;;  %s526_s11 = sphi %s557_s11, %s627_s11   ;;  %s522_s10 = sphi %s555_s10, %s626_s10   ;;  %s518_s9 = sphi %s553_s9, %s625_s9  }
   0x4   : > { %p26_p0 = scmp.ge.s32.totalorder %s24_s14, 2  ;;  %p62_p2 = scmp.eq.s32.totalorder %s534_s13, 0 }
   0x5   : > { %s54_s16 = sadd.s32 1, %s522_s10  ;;  %p413_p5 = scmp.ge.s32.totalorder %s534_s13, 2 }
   0x6   : > { %s630_s14 = smov (%p26_p0, %s24_s14), 0  ;;  %p63_p3 = por %p62_p2, %p61_p1 }
   0x7   : > { %s51_s15 = ssub.s32 %s530_s12, %s630_s14  ;;  %116 = sbr.rel (%p413_p5) target bundleno = 22 (0x16), region = 20 }
   0x8   : > { %p52_p4 = scmp.eq.s32.totalorder %s51_s15, 0 }
   0xa   : > { %s588_s17 = scalar_select %p52_p4, %s522_s10, %s54_s16  }
   0xe   : > { %119 = sbr.rel (!%p63_p3) target bundleno = 22 (0x16), region = 24  ;;  %s121_s18 = sand.u32 (%p63_p3), 1, %s522_s10  }
   0xf   : > { %s414_s19 = sshll.u32 (%p63_p3), %s530_s12, 2  ;;  %s443_s20 = smul.u32 (%p63_p3), 24, %s121_s18 }
  0x10   : > { %s126_s23 = scalar_lea.vmem (%p63_p3), %s623_s1, %s414_s19 }
  0x11   : > { %v142_v0 = vld [vmem:[%s126_s23] sm:$0xf] (%p63_p3)  ;;  %v144_v1 = vld [vmem:[%s126_s23 + $0x8] sm:$0xf] (%p63_p3)  ;;  %v146_v2 = vld [vmem:[%s126_s23 + $0x10] sm:$0xf] (%p63_p3) }
  0x12   : > { %v148_v3 = vld [vmem:[%s126_s23 + $0x18] sm:$0xf] (%p63_p3)  ;;  %v150_v4 = vld [vmem:[%s126_s23 + $0x20] sm:$0xf] (%p63_p3)  ;;  %s123_s24 = scalar_lea.vmem (%p63_p3), [#allocation2], %s443_s20 }
  0x13   : > { %143 = vst [vmem:[%s123_s24] sm:$0xf] (%p63_p3), %v142_v0  ;;  %145 = vst [vmem:[%s123_s24 + $0x4] sm:$0xf] (%p63_p3), %v144_v1  ;;  %v152_v5 = vld [vmem:[%s126_s23 + $0x28] sm:$0xf] (%p63_p3) }
  0x14   : > { %147 = vst [vmem:[%s123_s24 + $0x8] sm:$0xf] (%p63_p3), %v146_v2  ;;  %149 = vst [vmem:[%s123_s24 + $0xc] sm:$0xf] (%p63_p3), %v148_v3 }
  0x15   : > { %151 = vst [vmem:[%s123_s24 + $0x10] sm:$0xf] %v150_v4  ;;  %153 = vst [vmem:[%s123_s24 + $0x14] sm:$0xf] %v152_v5 }
  0x16 PF: > { %p415_p6 = scmp.ge.s32.totalorder %s534_s13, 1  ;;  %p187_p7 = scmp.lt.s32.totalorder %s534_s13, 3 }
  0x18   : > { %p188_p8 = pnand %p415_p6, %p187_p7 }
  0x19   : > { %s194_s25 = sand.u32 (!%p188_p8), 1, %s518_s9   ;;  %v536_v6 = vmov (!%p188_p8), 0.0   ;;  %vm537_vm0 = vmmov (!%p188_p8), 0   ;;  %v491_v10 = vld [vmem:[%s622_s0] sm:$0xff] (!%p188_p8)   ;;  %vm260_vm1 = vcmask (!%p188_p8), 392192   ;;  %p216_p9 = scmp.lt.s32.totalorder (!%p188_p8), %s526_s11, 1 }
  0x1a   : > { %191 = sbr.rel (%p188_p8) target bundleno = 294 (0x126), region = 65  ;;  %433 = vmatprep.subr.bf16.mxu0 (!%p188_p8), %v536_v6  ;;  %439 = vmatprep.mubr.msk.bf16.mxu0 (!%p188_p8), %vm537_vm0, %v536_v6 }
  0x1b   : > { %s444_s26 = smul.u32 (!%p188_p8), 24, %s194_s25 }
  0x1d   : > { %s196_s27 = scalar_lea.vmem (!%p188_p8), [#allocation2], %s444_s26 }
  0x1e   : > { %v488_v7 = vld [vmem:[%s196_s27] sm:$0xff] (!%p188_p8)   ;;  %v489_v8 = vld [vmem:[%s196_s27 + $0x8] sm:$0xff] (!%p188_p8)   ;;  %v490_v9 = vld [vmem:[%s196_s27 + $0x10] sm:$0xff] (!%p188_p8)  }
  0x1f   : > { %434 = vmatpush3.bf16.msra.mxu0 (!%p188_p8), %v488_v7 }
  0x20   : > { %435 = vmatprep.subr.bf16.mxu0 (!%p188_p8), %v536_v6 }
  0x21   : > { %s632_s11 = smov (!%p216_p9, %s526_s11), 1 }
  0x22   : > { %s445_s30 = smul.u32 24, %s632_s11 }
  0x23   : > { %436 = vmatpush3.bf16.msra.mxu0 %v489_v8 }
  0x24   : > { %437 = vmatprep.subr.bf16.mxu0 %v536_v6  ;;  %s220_s5 = scalar_lea.vmem %s624_s2, %s445_s30 }
  0x27   : > { %438 = vmatpush3.bf16.msra.mxu0 %v490_v9 }
  0x2a   : > { %440 = vmatmul.mubr.msk.bf16.vlgmr.msra.gmra.mrb[0].mxu0 %vm260_vm1, %v491_v10 }
  0xfd   : > { %v298_v11 = vpop.f32.mrb[0].mxu0 }
  0xfe   : > { %v308_v12 = vand.u32 2147483647, %v298_v11  ;;  %v441_v13 = vpop.f32.mrb[1].mxu0  ;;  %v321_v28 = vmax.f32 %v298_v11, 0.0 }
  0xff   : > { %v301_v14 = vpop.f32.mrb[2].mxu0 }
 0x100   : > { %v309_v15 = vsub.f32 0.0, %v308_v12  ;;  %vm305_vm2 = vcmp.gt.f32.partialorder %v301_v14, 0.0  ;;  %v442_v16 = vpop.f32.mrb[3].mxu0 }
 0x101   : > { %v422_v17 = vsel %vm305_vm2, 1.0, %v536_v6 }
 0x102   : > { %v310_v18 = vmul.f32 1.442695, %v309_v15  ;;  %v323_v19 = vmul.f32 %v422_v17, %v298_v11  ;;  %426 = vst [vmem:[%s220_s5 + $0x10] sm:$0xff] %v422_v17 }
 0x104   : > { %492 = vpow2.f32 %v310_v18 }
 0x10e   : > { %v493_v20 = vpop.eup %492 }
 0x10f   : > { %v312_v21 = vadd.f32 1.0, %v493_v20  ;;  %v315_v22 = vmul.f32 -0.5, %v493_v20  ;;  %v318_v24 = vand.u32 2147483647, %v493_v20 }
 0x111   : > { %494 = vlog2.f32 %v312_v21  ;;  %v316_v23 = vadd.f32 1.0, %v315_v22  ;;  %vm319_vm3 = vcmp.lt.f32.partialorder %v318_v24, 0.0004427343 }
 0x113   : > { %v317_v27 = vmul.f32 %v493_v20, %v316_v23 }
 0x11b   : > { %v495_v25 = vpop.eup %494 }
 0x11c   : > { %v314_v26 = vmul.f32 0.6931472, %v495_v25 }
 0x11e   : > { %v320_v29 = vsel %vm319_vm3, %v317_v27, %v314_v26 }
 0x11f   : > { %v322_v30 = vadd.f32 %v321_v28, %v320_v29 }
 0x121   : > { %v324_v31 = vsub.f32 %v322_v30, %v323_v19 }
 0x123   : > { %v325_v32 = vmul.f32 %v422_v17, %v324_v31  ;;  %331 = vst [vmem:[%s220_s5] sm:$0xff] %v324_v31 }
 0x125   : > { %424 = vst [vmem:[%s220_s5 + $0x8] sm:$0xff] %v325_v32 }
 0x126 PF: > { %s12_s13 = sadd.s32 1, %s534_s13   ;;  %s625_s9 = smov %s522_s10 }
 0x127   : > { %p9_p10 = scmp.ge.s32.totalorder %s12_s13, 4   ;;  %s626_s10 = smov %s588_s17 }
 0x128   : > { %s627_s11 = smov %s530_s12  ;;  %s628_s12 = smov %s630_s14 }
 0x129   :  { %11 = sbr.rel (!%p9_p10) target bundleno = 3 (0x3), region = 110 }

</bundles_post_ra>
